<compile_context>
chip_gen: v5e
topology: v5e:2x2
jax: 0.10.0
libtpu: 0.0.40
codegen_flags: <defaults>
</compile_context>

<pallas_src>
import functools

import jax
import jax.numpy as jnp
from jax.experimental import pallas as pl
from jax.experimental.pallas import tpu as pltpu

BN_EPS = 1e-5
LANE = 128          # lane width (last-dim pad target for dense stores)
SUBLANE_BF16 = 16   # bf16 sublane pack (minimum useful batch pad)


def _round_up(n, m):
    return ((n + m - 1) // m) * m


# ----------------------------------------------------------------------------
# Kernels
# ----------------------------------------------------------------------------
def _dgnn_mlp_fused_kernel(x_ref, w1_ref, b1_ref, w2_ref, b2_ref, out_ref,
                           *, n_valid, n_pad):
    """Single-block fused head: sigmoid(Linear2'(BN(ReLU(Linear1(x))))).

    BN affine (gamma/beta) is pre-folded into Linear2.  The batch is padded
    with zero rows; since a zero row maps to exactly ReLU(b1) after
    Linear1+ReLU, the batch statistics are corrected analytically instead of
    with a full-tile mask.
    """
    # Linear 1: bf16 operands, f32 accumulation on the MXU.
    h = jnp.dot(x_ref[...], w1_ref[...],
                preferred_element_type=jnp.float32) + b1_ref[...]
    h = jnp.maximum(h, 0.0)                    # act_first=True -> ReLU pre-norm

    # BatchNorm1d training-mode (biased) stats over the n_valid real rows.
    pad_row = jnp.maximum(b1_ref[...], 0.0)    # (1, H) contribution of each pad row
    s = jnp.sum(h, axis=0, keepdims=True) - n_pad * pad_row
    ss = jnp.sum(h * h, axis=0, keepdims=True) - n_pad * (pad_row * pad_row)
    mean = s / n_valid
    var = ss / n_valid - mean * mean
    z = (h - mean) * jax.lax.rsqrt(jnp.maximum(var, 0.0) + BN_EPS)

    # TODO(synk): Dropout(p=0.3) omitted (identity / inference behaviour).

    # Linear 2 (plain_last=True), output padded to a lane-dense width.
    o = jnp.dot(z.astype(jnp.bfloat16), w2_ref[...],
                preferred_element_type=jnp.float32) + b2_ref[...]

    # sigmoid via tanh: one EUP push, exactly bounded in [0, 1].
    out_ref[...] = (0.5 * jnp.tanh(0.5 * o) + 0.5).astype(out_ref.dtype)


def _dgnn_stats_kernel(x_ref, w1_ref, b1_ref, s_ref, ss_ref):
    """Pass 1 (tiled path): accumulate per-column sum / sum-of-squares of
    ReLU(x @ w1 + b1) across batch tiles (reduction axis -> 'arbitrary')."""
    @pl.when(pl.program_id(0) == 0)
    def _():
        s_ref[...] = jnp.zeros_like(s_ref)
        ss_ref[...] = jnp.zeros_like(ss_ref)

    h = jnp.maximum(
        jnp.dot(x_ref[...], w1_ref[...], preferred_element_type=jnp.float32)
        + b1_ref[...], 0.0)
    s_ref[...] += jnp.sum(h, axis=0, keepdims=True)
    ss_ref[...] += jnp.sum(h * h, axis=0, keepdims=True)


def _dgnn_finalize_kernel(x_ref, w1_ref, b1_ref, mean_ref, rstd_ref,
                          w2_ref, b2_ref, out_ref):
    """Pass 2 (tiled path): recompute Linear1+ReLU for the tile, whiten with
    the precomputed mean/rstd, Linear2, sigmoid.  Batch axis is 'parallel'."""
    h = jnp.maximum(
        jnp.dot(x_ref[...], w1_ref[...], preferred_element_type=jnp.float32)
        + b1_ref[...], 0.0)
    z = (h - mean_ref[...]) * rstd_ref[...]
    o = jnp.dot(z.astype(jnp.bfloat16), w2_ref[...],
                preferred_element_type=jnp.float32) + b2_ref[...]
    out_ref[...] = (0.5 * jnp.tanh(0.5 * o) + 0.5).astype(out_ref.dtype)


# ----------------------------------------------------------------------------
# One-time parameter preparation (hoisted out of the forward path)
# ----------------------------------------------------------------------------
def prepare_mlp_params(w1, b1, gamma, beta, w2, b2):
    """Fold BN affine into Linear2, pad Linear2 to 128 output lanes, cast the
    MXU operands to bf16.  Call ONCE at parameter-load time."""
    h1, out_dim = w2.shape
    gamma = gamma.reshape(1, h1)
    beta = beta.reshape(1, h1)

    # (z*gamma + beta) @ w2 + b2  ==  z @ (gamma.T * w2) + (beta @ w2 + b2)
    w2f = gamma.reshape(h1, 1) * w2
    b2f = (beta @ w2 + b2.reshape(1, out_dim))

    out_pad = max(LANE, _round_up(out_dim, LANE))   # lane-dense stores
    w2p = jnp.zeros((h1, out_pad), jnp.float32).at[:, :out_dim].set(w2f)
    b2p = jnp.zeros((1, out_pad), jnp.float32).at[:, :out_dim].set(b2f)

    return dict(
        w1=w1.astype(jnp.bfloat16),
        b1=b1.reshape(1, h1).astype(jnp.float32),
        w2=w2p.astype(jnp.bfloat16),
        b2=b2p,
        out_dim=out_dim,
    )


# ----------------------------------------------------------------------------
# Forward wrappers
# ----------------------------------------------------------------------------
def _mlp_head_small(params, x, out_dtype):
    """Single-block fused path (small batches, one kernel launch)."""
    B, in_dim = x.shape
    out_pad = params["w2"].shape[1]

    # Pad only to the bf16 sublane pack (multiple of 16), not 128.
    b_pad = _round_up(max(B, SUBLANE_BF16), SUBLANE_BF16)
    x_p = jnp.zeros((b_pad, in_dim), jnp.bfloat16).at[:B].set(
        x.astype(jnp.bfloat16))

    kernel = functools.partial(_dgnn_mlp_fused_kernel,
                               n_valid=float(B), n_pad=float(b_pad - B))
    vmem = functools.partial(pl.BlockSpec, memory_space=pltpu.MemorySpace.VMEM)

    out = pl.pallas_call(
        kernel,
        out_shape=jax.ShapeDtypeStruct((b_pad, out_pad), out_dtype),
        in_specs=[vmem(), vmem(), vmem(), vmem(), vmem()],
        out_specs=vmem(),
    )(x_p, params["w1"], params["b1"], params["w2"], params["b2"])

    return out[:B, :params["out_dim"]]


def _mlp_head_tiled(params, x, row_tile, out_dtype):
    """Gridded two-pass path for large batches: pipelined batch tiles,
    accumulate-then-finalize BN.  Sized well inside v7x's 64 MiB VMEM."""
    B, in_dim = x.shape
    h1 = params["w1"].shape[1]
    out_pad = params["w2"].shape[1]

    row_tile = _round_up(row_tile, SUBLANE_BF16)
    b_pad = _round_up(B, row_tile)
    nb = b_pad // row_tile
    x_p = jnp.zeros((b_pad, in_dim), jnp.bfloat16).at[:B].set(
        x.astype(jnp.bfloat16))

    # Pass 1: batch-tile reduction of sum / sum-of-squares (axis 'arbitrary').
    s_tot, ss_tot = pl.pallas_call(
        _dgnn_stats_kernel,
        grid=(nb,),
        in_specs=[pl.BlockSpec((row_tile, in_dim), lambda i: (i, 0)),
                  pl.BlockSpec((in_dim, h1), lambda i: (0, 0)),
                  pl.BlockSpec((1, h1), lambda i: (0, 0))],
        out_specs=(pl.BlockSpec((1, h1), lambda i: (0, 0)),
                   pl.BlockSpec((1, h1), lambda i: (0, 0))),
        out_shape=(jax.ShapeDtypeStruct((1, h1), jnp.float32),
                   jax.ShapeDtypeStruct((1, h1), jnp.float32)),
        compiler_params=pltpu.CompilerParams(
            dimension_semantics=("arbitrary",),
            vmem_limit_bytes=32 * 1024 * 1024),
    )(x_p, params["w1"], params["b1"])

    # Padded rows contribute exactly ReLU(b1); correct analytically (1x128 math).
    pad = float(b_pad - B)
    n_f = float(B)
    pad_row = jnp.maximum(params["b1"], 0.0)
    mean = (s_tot - pad * pad_row) / n_f
    var = (ss_tot - pad * pad_row * pad_row) / n_f - mean * mean
    rstd = jax.lax.rsqrt(jnp.maximum(var, 0.0) + BN_EPS)

    # Pass 2: whiten + Linear2 + sigmoid, batch axis 'parallel' (v7x 2 TCs).
    out = pl.pallas_call(
        _dgnn_finalize_kernel,
        grid=(nb,),
        in_specs=[pl.BlockSpec((row_tile, in_dim), lambda i: (i, 0)),
                  pl.BlockSpec((in_dim, h1), lambda i: (0, 0)),
                  pl.BlockSpec((1, h1), lambda i: (0, 0)),
                  pl.BlockSpec((1, h1), lambda i: (0, 0)),
                  pl.BlockSpec((1, h1), lambda i: (0, 0)),
                  pl.BlockSpec((h1, out_pad), lambda i: (0, 0)),
                  pl.BlockSpec((1, out_pad), lambda i: (0, 0))],
        out_specs=pl.BlockSpec((row_tile, out_pad), lambda i: (i, 0)),
        out_shape=jax.ShapeDtypeStruct((b_pad, out_pad), out_dtype),
        compiler_params=pltpu.CompilerParams(
            dimension_semantics=("parallel",),
            vmem_limit_bytes=32 * 1024 * 1024),
    )(x_p, params["w1"], params["b1"], mean, rstd,
      params["w2"], params["b2"])

    return out[:B, :params["out_dim"]]


def dgnn_mlp_head(params, x, *, row_tile=None, out_dtype=jnp.float32):
    """Fused MLP head forward.  `params` must come from prepare_mlp_params().

    row_tile=None (or B <= row_tile): single fused kernel launch.
    row_tile=N: gridded two-pass BN with N-row batch tiles (large batches).
    out_dtype=jnp.bfloat16 halves store/writeback bytes (useful on v5e).
    """
    B = x.shape[0]
    if B == 0:
        return jnp.zeros((0, params["out_dim"]), out_dtype)
    if row_tile is None or B <= row_tile:
        return _mlp_head_small(params, x, out_dtype)
    return _mlp_head_tiled(params, x, row_tile, out_dtype)


# ----------------------------------------------------------------------------
# remap_embeddings (gather formulation — no TPU scatter)
# ----------------------------------------------------------------------------
def remap_embeddings_jax(flat_emb, node_id):
    """Pack embeddings of valid (node_id != -1) history slots to the front of
    each row (history order preserved), zero-fill the rest, flatten to
    (batch, hist_len * emb_dim)."""
    B, H = node_id.shape
    C = flat_emb.shape[-1]
    valid = node_id != -1
    order = jnp.argsort(jnp.where(valid, 0, 1), axis=1, stable=True)     # (B, H)
    gathered = jnp.take_along_axis(flat_emb, order[..., None], axis=1)   # (B, H, C)
    count = jnp.sum(valid, axis=1, keepdims=True)                        # (B, 1)
    slot = jnp.arange(H)[None, :]
    keep = (slot < count)[..., None].astype(flat_emb.dtype)
    return (gathered * keep).reshape(B, H * C)


# ----------------------------------------------------------------------------
# Pure-JAX f32 reference (training-mode BN, no dropout)
# ----------------------------------------------------------------------------
def mlp_head_reference(x, w1, b1, gamma, beta, w2, b2):
    h = jnp.maximum(x @ w1 + b1, 0.0)
    mu = jnp.mean(h, axis=0, keepdims=True)
    vr = jnp.mean((h - mu) ** 2, axis=0, keepdims=True)
    bn = (h - mu) * jax.lax.rsqrt(vr + BN_EPS) * gamma + beta
    return jax.nn.sigmoid(bn @ w2 + b2)


if __name__ == "__main__":
    key = jax.random.PRNGKey(0)
    B, H, C = 8, 8, 32            # batch_size, hist_len, graph_out_channels
    MLP_DIMS = [128, 64]
    NUM_NODES = 64
    IN_DIM = H * C                # width produced by remap_embeddings .view(batch, -1)

    keys = jax.random.split(key, 12)

    # node_id with -1 padding; node_time only feeds the (external) sampler.
    ids = jax.random.randint(keys[0], (B, H), 0, NUM_NODES)
    keep = jax.random.bernoulli(keys[7], 0.7, (B, H))
    node_id = jnp.where(keep, ids, -1)
    node_time = jax.random.uniform(keys[1], (B, H))

    # TODO(synk): NeighborSampler.sample_from_nodes + the recursive self.dgnn
    # temporal graph convolution are external/undefined modules; their per-node
    # output embedding is stood in by a deterministic embedding-table lookup.
    node_table = jax.random.normal(keys[2], (NUM_NODES, C), jnp.float32)
    flat_emb = node_table[jnp.clip(node_id, 0)]               # (B, H, C) gather

    # remap_embeddings -> (B, H*C)
    x = remap_embeddings_jax(flat_emb, node_id)

    # MLP params: Linear(256,128) -> ReLU -> BatchNorm1d(128) -> Dropout -> Linear(128,64)
    w1 = jax.random.normal(keys[3], (IN_DIM, MLP_DIMS[0]), jnp.float32) / jnp.sqrt(IN_DIM)
    b1 = jax.random.normal(keys[4], (1, MLP_DIMS[0]), jnp.float32) * 0.01
    gamma = 1.0 + 0.1 * jax.random.normal(keys[9], (1, MLP_DIMS[0]), jnp.float32)
    beta = 0.05 * jax.random.normal(keys[10], (1, MLP_DIMS[0]), jnp.float32)
    w2 = jax.random.normal(keys[5], (MLP_DIMS[0], MLP_DIMS[1]), jnp.float32) / jnp.sqrt(MLP_DIMS[0])
    b2 = jax.random.normal(keys[6], (1, MLP_DIMS[1]), jnp.float32) * 0.01

    # One-time parameter prep (BN fold, lane pad, bf16 cast) — NOT in the hot path.
    params = prepare_mlp_params(w1, b1, gamma, beta, w2, b2)

    # --- small-batch fused path ---------------------------------------------
    y_pred = jax.block_until_ready(dgnn_mlp_head(params, x))
    y_ref = mlp_head_reference(x, w1, b1, gamma, beta, w2, b2)
    assert y_pred.shape == (B, MLP_DIMS[1])
    assert bool(jnp.all(jnp.isfinite(y_pred)))
    assert bool(jnp.all((y_pred >= 0.0) & (y_pred <= 1.0)))   # exactly bounded (tanh form)
    assert bool(jnp.allclose(y_pred, y_ref, atol=5e-2, rtol=5e-2))

    # --- gridded two-pass path (large-batch scaling), small demo sizes -------
    B2 = 48
    x2 = jax.random.normal(keys[8], (B2, IN_DIM), jnp.float32)
    y2 = jax.block_until_ready(dgnn_mlp_head(params, x2, row_tile=16))
    y2_ref = mlp_head_reference(x2, w1, b1, gamma, beta, w2, b2)
    assert y2.shape == (B2, MLP_DIMS[1])
    assert bool(jnp.all(jnp.isfinite(y2)))
    assert bool(jnp.all((y2 >= 0.0) & (y2 <= 1.0)))
    assert bool(jnp.allclose(y2, y2_ref, atol=5e-2, rtol=5e-2))

    print("KERNEL_OK")
</pallas_src>

<mosaic_0001>
module attributes {stable_mosaic.version = 11 : i64} {
  func.func @_dgnn_mlp_fused_kernel(%arg0: memref<16x256xbf16, #tpu.memory_space<vmem>>, %arg1: memref<256x128xbf16, #tpu.memory_space<vmem>>, %arg2: memref<1x128xf32, #tpu.memory_space<vmem>>, %arg3: memref<128x128xbf16, #tpu.memory_space<vmem>>, %arg4: memref<1x128xf32, #tpu.memory_space<vmem>>, %arg5: memref<16x128xf32, #tpu.memory_space<vmem>>) attributes {dimension_semantics = [], scalar_prefetch = 0 : i64, scratch_operands = 0 : i64, tpu.core_type = #tpu.core_type<tc>} {
    %c0 = arith.constant 0 : index
    %c0_0 = arith.constant 0 : index
    %0 = vector.load %arg0[%c0, %c0_0] : memref<16x256xbf16, #tpu.memory_space<vmem>>, vector<16x256xbf16>
    %c0_1 = arith.constant 0 : index
    %c0_2 = arith.constant 0 : index
    %1 = vector.load %arg1[%c0_1, %c0_2] : memref<256x128xbf16, #tpu.memory_space<vmem>>, vector<256x128xbf16>
    %cst = arith.constant dense<0.000000e+00> : vector<16x128xf32>
    %2 = tpu.matmul %0, %1, %cst {dimension_numbers = #tpu.dot_dimension_numbers<[1], [0], [0], [1], [0, 0, 1, 1], [], []>} : vector<16x256xbf16>, vector<256x128xbf16>, vector<16x128xf32> -> vector<16x128xf32>
    %c0_3 = arith.constant 0 : index
    %c0_4 = arith.constant 0 : index
    %3 = vector.load %arg2[%c0_3, %c0_4] : memref<1x128xf32, #tpu.memory_space<vmem>>, vector<1x128xf32>
    %4 = vector.broadcast %3 : vector<1x128xf32> to vector<16x128xf32>
    %5 = arith.addf %2, %4 : vector<16x128xf32>
    %cst_5 = arith.constant 0.000000e+00 : f32
    %6 = vector.broadcast %cst_5 : f32 to vector<16x128xf32>
    %7 = arith.maximumf %5, %6 : vector<16x128xf32>
    %c0_6 = arith.constant 0 : index
    %c0_7 = arith.constant 0 : index
    %8 = vector.load %arg2[%c0_6, %c0_7] : memref<1x128xf32, #tpu.memory_space<vmem>>, vector<1x128xf32>
    %cst_8 = arith.constant 0.000000e+00 : f32
    %9 = vector.broadcast %cst_8 : f32 to vector<1x128xf32>
    %10 = arith.maximumf %8, %9 : vector<1x128xf32>
    %cst_9 = arith.constant dense<0.000000e+00> : vector<128xf32>
    %11 = vector.multi_reduction <add>, %7, %cst_9 [0] : vector<16x128xf32> to vector<128xf32>
    %12 = vector.shape_cast %11 : vector<128xf32> to vector<1x128xf32>
    %cst_10 = arith.constant 8.000000e+00 : f32
    %13 = vector.broadcast %cst_10 : f32 to vector<1x128xf32>
    %14 = arith.mulf %13, %10 : vector<1x128xf32>
    %15 = arith.subf %12, %14 : vector<1x128xf32>
    %16 = arith.mulf %7, %7 : vector<16x128xf32>
    %cst_11 = arith.constant dense<0.000000e+00> : vector<128xf32>
    %17 = vector.multi_reduction <add>, %16, %cst_11 [0] : vector<16x128xf32> to vector<128xf32>
    %18 = vector.shape_cast %17 : vector<128xf32> to vector<1x128xf32>
    %19 = arith.mulf %10, %10 : vector<1x128xf32>
    %cst_12 = arith.constant 8.000000e+00 : f32
    %20 = vector.broadcast %cst_12 : f32 to vector<1x128xf32>
    %21 = arith.mulf %20, %19 : vector<1x128xf32>
    %22 = arith.subf %18, %21 : vector<1x128xf32>
    %cst_13 = arith.constant 8.000000e+00 : f32
    %23 = vector.broadcast %cst_13 : f32 to vector<1x128xf32>
    %24 = arith.divf %15, %23 : vector<1x128xf32>
    %cst_14 = arith.constant 8.000000e+00 : f32
    %25 = vector.broadcast %cst_14 : f32 to vector<1x128xf32>
    %26 = arith.divf %22, %25 : vector<1x128xf32>
    %27 = arith.mulf %24, %24 : vector<1x128xf32>
    %28 = arith.subf %26, %27 : vector<1x128xf32>
    %29 = vector.broadcast %24 : vector<1x128xf32> to vector<16x128xf32>
    %30 = arith.subf %7, %29 : vector<16x128xf32>
    %cst_15 = arith.constant 0.000000e+00 : f32
    %31 = vector.broadcast %cst_15 : f32 to vector<1x128xf32>
    %32 = arith.maximumf %28, %31 : vector<1x128xf32>
    %cst_16 = arith.constant 9.99999974E-6 : f32
    %33 = vector.broadcast %cst_16 : f32 to vector<1x128xf32>
    %34 = arith.addf %32, %33 : vector<1x128xf32>
    %35 = math.rsqrt %34 : vector<1x128xf32>
    %36 = vector.broadcast %35 : vector<1x128xf32> to vector<16x128xf32>
    %37 = arith.mulf %30, %36 : vector<16x128xf32>
    %38 = arith.truncf %37 : vector<16x128xf32> to vector<16x128xbf16>
    %c0_17 = arith.constant 0 : index
    %c0_18 = arith.constant 0 : index
    %39 = vector.load %arg3[%c0_17, %c0_18] : memref<128x128xbf16, #tpu.memory_space<vmem>>, vector<128x128xbf16>
    %cst_19 = arith.constant dense<0.000000e+00> : vector<16x128xf32>
    %40 = tpu.matmul %38, %39, %cst_19 {dimension_numbers = #tpu.dot_dimension_numbers<[1], [0], [0], [1], [0, 0, 1, 1], [], []>} : vector<16x128xbf16>, vector<128x128xbf16>, vector<16x128xf32> -> vector<16x128xf32>
    %c0_20 = arith.constant 0 : index
    %c0_21 = arith.constant 0 : index
    %41 = vector.load %arg4[%c0_20, %c0_21] : memref<1x128xf32, #tpu.memory_space<vmem>>, vector<1x128xf32>
    %42 = vector.broadcast %41 : vector<1x128xf32> to vector<16x128xf32>
    %43 = arith.addf %40, %42 : vector<16x128xf32>
    %cst_22 = arith.constant 5.000000e-01 : f32
    %44 = vector.broadcast %cst_22 : f32 to vector<16x128xf32>
    %45 = arith.mulf %44, %43 : vector<16x128xf32>
    %46 = math.tanh %45 : vector<16x128xf32>
    %cst_23 = arith.constant 5.000000e-01 : f32
    %47 = vector.broadcast %cst_23 : f32 to vector<16x128xf32>
    %48 = arith.mulf %47, %46 : vector<16x128xf32>
    %cst_24 = arith.constant 5.000000e-01 : f32
    %49 = vector.broadcast %cst_24 : f32 to vector<16x128xf32>
    %50 = arith.addf %48, %49 : vector<16x128xf32>
    %c0_25 = arith.constant 0 : index
    %c0_26 = arith.constant 0 : index
    %51 = vector.load %arg5[%c0_25, %c0_26] : memref<16x128xf32, #tpu.memory_space<vmem>>, vector<16x128xf32>
    tpu.vector_store %arg5[%c0_25, %c0_26], %50 {strides = array<i32>} : memref<16x128xf32, #tpu.memory_space<vmem>>, vector<16x128xf32>,
    return
  }
}

</mosaic_0001>

<bundles_post_ra>
// kernel: tpu_custom_call.1
= control target key start
LH: loop header
LB: loop body
LE: loop exit
PB: predicated region body
PF: predicated region fallthrough
CT: control target
= control target key end

     0   :  { %10 = vsyncpa [#allocation3], 0  ;;  %s723_s0 = inlined_call_operand.hbm [shape: bf16[16,256], index: 0, kind: input, shape index: {}]   ;;  %s724_s1 = inlined_call_operand.hbm [shape: bf16[256,128], index: 1, kind: input, shape index: {}]   ;;  %s725_s2 = inlined_call_operand.vmem [shape: f32[1,128], index: 2, kind: input, shape index: {}]   ;;  %s726_s3 = inlined_call_operand.hbm [shape: bf16[128,128], index: 3, kind: input, shape index: {}]   ;;  %s727_s4 = inlined_call_operand.vmem [shape: f32[1,128], index: 4, kind: input, shape index: {}]   ;;  %s728_s5 = inlined_call_operand.hbm [shape: f32[16,128], index: 5, kind: output, shape index: {}]  }
   0x1   :  { %11 = vsyncpa [#allocation6], 0  ;;  %s30_s20 = sshll.u32 %s724_s1, 4  ;;  %s31_s20 = int_to_ptr.hbm [resolvable:$true] %s30_s20 }
   0x2   :  { %12 = vsyncpa [#allocation4], 0  ;;  %s657_s21 = smov [#allocation5]   ;;  %s17_s25 = sshll.u32 %s723_s0, 4  ;;  %s18_s25 = int_to_ptr.hbm [resolvable:$true] %s17_s25 }
   0x3   :  { %s32_s22 = sshll.u32 %s657_s21, 4  ;;  %s658_s26 = smov 64   ;;  %s33_s22 = int_to_ptr.vmem [resolvable:$true] %s32_s22 }
   0x4   :  { %s659_s27 = smov 4   ;;  %s660_s28 = smov [#allocation2]  }
   0x5   :  { %38 = dma.hbm_to_vmem [thread:$0]  %s31_s20, 2048, %s33_s22, [#allocation6], %s658_s26, %s658_s26, %s659_s27  }
   0x6   :  { %s19_s29 = sshll.u32 %s660_s28, 4  ;;  %s661_s30 = smov 128   ;;  %s20_s29 = int_to_ptr.vmem [resolvable:$true] %s19_s29 }
   0x7   :  { %s662_s6 = smov 8   ;;  %s45_s8 = sshll.u32 %s726_s3, 4  ;;  %s46_s8 = int_to_ptr.hbm [resolvable:$true] %s45_s8 }
   0x8   :  { %25 = dma.hbm_to_vmem [thread:$0]  %s18_s25, 256, %s20_s29, [#allocation3], %s661_s30, %s661_s30, %s662_s6  }
   0x9   :  { %s663_s9 = smov [#allocation7]  }
   0xa   :  { %s47_s0 = sshll.u32 %s663_s9, 4  ;;  %s48_s0 = int_to_ptr.vmem [resolvable:$true] %s47_s0 }
   0xb   :  { %53 = dma.hbm_to_vmem [thread:$0]  %s46_s8, 1024, %s48_s0, [#allocation6], %s658_s26, %s658_s26, %s659_s27  }
   0xc   :  { %651 = dma.done.wait [#allocation3], 256  }
   0xd   :  { %652 = vsyncadd [#allocation3], 4294967040 }
   0xe   :  { %653 = dma.done.wait [#allocation6], 3072  }
   0xf   :  { %654 = vsyncadd [#allocation6], 4294964224  ;;  %v519_v0 = vld [vmem:[#allocation5 + $0x38] sm:$0xff]  ;;  %v518_v2 = vld [vmem:[#allocation5 + $0x30] sm:$0xff]  ;;  %v664_v29 = vmov 8.0   ;;  %s665_s14 = smov [#allocation8]  }
  0x10   :  { %v527_v1 = vld [vmem:[#allocation5 + $0x78] sm:$0xff]  ;;  %212 = vmatpush.bf16.msra.mxu0 %v519_v0  ;;  %v526_v3 = vld [vmem:[#allocation5 + $0x70] sm:$0xff]  ;;  %v517_v4 = vld [vmem:[#allocation5 + $0x28] sm:$0xff]  ;;  %547 = vrcp.f32 %v664_v29  ;;  %s390_s15 = sshll.u32 %s665_s14, 4  ;;  %s392_s18 = sshll.u32 %s728_s5, 4  ;;  %s391_s15 = int_to_ptr.vmem [resolvable:$true] %s390_s15  ;;  %s393_s18 = int_to_ptr.hbm [resolvable:$true] %s392_s18 }
  0x11   :  { %226 = vmatpush.bf16.msra.mxu1 %v527_v1  ;;  %v525_v5 = vld [vmem:[#allocation5 + $0x68] sm:$0xff]  ;;  %v516_v6 = vld [vmem:[#allocation5 + $0x20] sm:$0xff]  ;;  %v515_v8 = vld [vmem:[#allocation5 + $0x18] sm:$0xff] }
  0x12   :  { %v524_v7 = vld [vmem:[#allocation5 + $0x60] sm:$0xff]  ;;  %v523_v9 = vld [vmem:[#allocation5 + $0x58] sm:$0xff]  ;;  %v514_v10 = vld [vmem:[#allocation5 + $0x10] sm:$0xff] }
  0x13   :  { %v522_v11 = vld [vmem:[#allocation5 + $0x50] sm:$0xff]  ;;  %v513_v12 = vld [vmem:[#allocation5 + $0x8] sm:$0xff]  ;;  %v512_v14 = vld [vmem:[#allocation5] sm:$0xff] }
  0x14   :  { %213 = vmatpush.bf16.msra.mxu0 %v518_v2  ;;  %v521_v13 = vld [vmem:[#allocation5 + $0x48] sm:$0xff]  ;;  %v520_v15 = vld [vmem:[#allocation5 + $0x40] sm:$0xff]  ;;  %v408_v16 = vld [vmem:[#allocation2] sm:$0xf] }
  0x15   :  { %227 = vmatpush.bf16.msra.mxu1 %v526_v3  ;;  %v511_v17 = vld [vmem:[#allocation2 + $0x4] sm:$0xf0]  ;;  %v510_v18 = vld [vmem:[#allocation2 + $0x4] sm:$0xf]  ;;  %v410_v19 = vld [vmem:[#allocation2 + $0x8] sm:$0xf0] }
  0x16   :  { %v409_v20 = vor.u32 %v511_v17, %v408_v16  ;;  %v413_v21 = vor.u32 %v510_v18, %v410_v19  ;;  %v535_v22 = vld [vmem:[#allocation7 + $0x38] sm:$0xff]  ;;  %v545_v23 = vld [vmem:[%s725_s2] ss:$0 sm:$0xff]  ;;  %v533_v28 = vld [vmem:[#allocation7 + $0x28] sm:$0xff]  ;;  %v548_v33 = vpop.eup %547 }
  0x17   :  { %362 = vmatpush.bf16.msra.mxu2 %v535_v22  ;;  %v534_v24 = vld [vmem:[#allocation7 + $0x30] sm:$0xff]  ;;  %v532_v31 = vld [vmem:[#allocation7 + $0x20] sm:$0xff]  ;;  %v531_v38 = vld [vmem:[#allocation7 + $0x18] sm:$0xff]  ;;  %v265_v39 = vmul.f32 8.0, %v548_v33  ;;  %vm269_vm0 = vweird.f32 %v548_v33 }
  0x18   :  { %214 = vmatpush.bf16.msra.mxu0 %v517_v4  ;;  %v530_v44 = vld [vmem:[#allocation7 + $0x10] sm:$0xff]  ;;  %v529_v52 = vld [vmem:[#allocation7 + $0x8] sm:$0xff]  ;;  %v528_v59 = vld [vmem:[#allocation7] sm:$0xff] }
  0x19   :  { %228 = vmatpush.bf16.msra.mxu1 %v525_v5  ;;  %v102_v45 = vld [vmem:[%s725_s2] sm:$0x1]  ;;  %v266_v46 = vsub.f32 1.0, %v265_v39 }
  0x1a   :  { %v242_v49 = vmax.f32 %v102_v45, 0.0 }
  0x1b   :  { %363 = vmatpush.bf16.msra.mxu2 %v534_v24  ;;  %v267_v53 = vmul.f32 %v548_v33, %v266_v46 }
  0x1c   :  { %215 = vmatpush.bf16.msra.mxu0 %v516_v6  ;;  %v261_v56 = vmul.f32 %v242_v49, %v242_v49  ;;  %v250_v61 = vmul.f32 8.0, %v242_v49 }
  0x1d   :  { %229 = vmatpush.bf16.msra.mxu1 %v524_v7  ;;  %v268_v60 = vadd.f32 %v548_v33, %v267_v53 }
  0x1e   :  { %v262_v0 = vmul.f32 8.0, %v261_v56 }
  0x1f   :  { %364 = vmatpush.bf16.msra.mxu2 %v533_v28  ;;  %v270_v3 = vsel %vm269_vm0, %v548_v33, %v268_v60 }
  0x20   :  { %216 = vmatpush.bf16.msra.mxu0 %v515_v8 }
  0x21   :  { %230 = vmatpush.bf16.msra.mxu1 %v523_v9 }
  0x23   :  { %365 = vmatpush.bf16.msra.mxu2 %v532_v31 }
  0x24   :  { %217 = vmatpush.bf16.msra.mxu0 %v514_v10 }
  0x25   :  { %231 = vmatpush.bf16.msra.mxu1 %v522_v11 }
  0x27   :  { %366 = vmatpush.bf16.msra.mxu2 %v531_v38 }
  0x28   :  { %218 = vmatpush.bf16.msra.mxu0 %v513_v12 }
  0x29   :  { %232 = vmatpush.bf16.msra.mxu1 %v521_v13 }
  0x2b   :  { %367 = vmatpush.bf16.msra.mxu2 %v530_v44 }
  0x2c   :  { %219 = vmatpush.bf16.msra.mxu0 %v512_v14 }
  0x2d   :  { %233 = vmatpush.bf16.msra.mxu1 %v520_v15 }
  0x2f   :  { %220 = vmatmul.bf16.vlgmr.msra.gmra.mxu0 %v409_v20  ;;  %368 = vmatpush.bf16.msra.mxu2 %v529_v52 }
  0x30   :  { %234 = vmatmul.bf16.vlgmr.msra.gmra.mxu1 %v413_v21 }
  0x33   :  { %369 = vmatpush.bf16.msra.mxu2 %v528_v59 }
  0xac   :  { %v221_v25 = vpop.f32.mrf.mxu0 }
  0xad   :  { %v235_v26 = vpop.f32.mrf.mxu1  ;;  %v222_v27 = vadd.f32 %v545_v23, %v221_v25 }
  0xaf   :  { %v236_v30 = vadd.f32 %v235_v26, %v222_v27  ;;  %v546_v27 = vld [vmem:[%s727_s4] ss:$0 sm:$0xff] }
  0xb1   :  { %v240_v36 = vmax.f32 %v236_v30, 0.0 }
  0xb3   :  { %v252_v41 = vmul.f32 %v240_v36, %v240_v36 }
  0xb4   :  { %v223_v32 = vpop.f32.mrf.mxu0 }
  0xb5   :  { %v224_v34 = vadd.f32 %v545_v23, %v223_v32  ;;  %v237_v35 = vpop.f32.mrf.mxu1 }
  0xb7   :  { %v238_v37 = vadd.f32 %v237_v35, %v224_v34 }
  0xb9   :  { %v241_v40 = vmax.f32 %v238_v37, 0.0 }
  0xbb   :  { %v243_v42 = vadd.f32 %v241_v40, %v240_v36  ;;  %v253_v43 = vmul.f32 %v241_v40, %v241_v40 }
  0xbd   :  { %v244_v47 = vrot.slane %v243_v42, 4  ;;  %v254_v48 = vadd.f32 %v253_v43, %v252_v41 }
  0xbf   :  { %v245_v50 = vadd.f32 %v244_v47, %v243_v42  ;;  %v255_v51 = vrot.slane %v254_v48, 4 }
  0xc1   :  { %v246_v54 = vrot.slane %v245_v50, 2  ;;  %v256_v55 = vadd.f32 %v255_v51, %v254_v48 }
  0xc3   :  { %v247_v57 = vadd.f32 %v246_v54, %v245_v50  ;;  %v257_v58 = vrot.slane %v256_v55, 2 }
  0xc5   :  { %v248_v62 = vrot.slane %v247_v57, 1  ;;  %v258_v63 = vadd.f32 %v257_v58, %v256_v55 }
  0xc7   :  { %v249_v1 = vadd.f32 %v248_v62, %v247_v57  ;;  %v259_v2 = vrot.slane %v258_v63, 1 }
  0xc9   :  { %v260_v4 = vadd.f32 %v259_v2, %v258_v63  ;;  %v251_v5 = vsub.f32 %v249_v1, %v250_v61 }
  0xcb   :  { %v263_v6 = vsub.f32 %v260_v4, %v262_v0  ;;  %v271_v7 = vmul.f32 %v270_v3, %v251_v5 }
  0xcd   :  { %v272_v8 = vmul.f32 %v270_v3, %v263_v6  ;;  %v273_v9 = vmul.f32 %v271_v7, %v271_v7  ;;  %v275_v18 = vperm.slane %v271_v7, 0 }
  0xcf   :  { %v274_v10 = vsub.f32 %v272_v8, %v273_v9  ;;  %v276_v21 = vsub.f32 %v240_v36, %v275_v18  ;;  %v277_v22 = vsub.f32 %v241_v40, %v275_v18 }
  0xd1   :  { %v278_v11 = vmax.f32 %v274_v10, 0.0 }
  0xd3   :  { %v279_v12 = vadd.f32 1e-05, %v278_v11 }
  0xd5   :  { %549 = vrsqrt.f32 %v279_v12  ;;  %vm286_vm2 = vweird.f32 %v279_v12 }
  0xdb   :  { %v550_v13 = vpop.eup %549 }
  0xdc   :  { %v281_v14 = vmul.f32 %v550_v13, %v279_v12  ;;  %vm287_vm1 = vweird.f32 %v550_v13 }
  0xdd   :  { %vm288_vm3 = vmor %vm286_vm2, %vm287_vm1 }
  0xde   :  { %v282_v15 = vmul.f32 %v550_v13, %v281_v14 }
  0xe0   :  { %v283_v16 = vmul.f32 0.5, %v282_v15 }
  0xe2   :  { %v284_v17 = vsub.f32 1.5, %v283_v16 }
  0xe4   :  { %v285_v19 = vmul.f32 %v550_v13, %v284_v17 }
  0xe6   :  { %v289_v20 = vsel %vm288_vm3, %v550_v13, %v285_v19 }
  0xe7   :  { %v290_v23 = vperm.slane %v289_v20, 0 }
  0xe9   :  { %v291_v24 = vmul.f32 %v290_v23, %v276_v21  ;;  %v292_v25 = vmul.f32 %v290_v23, %v277_v22 }
  0xeb   :  { %v293_v26 = vpack.c.bf16 %v292_v25, %v291_v24 }
  0xed   :  { %370 = vmatmul.bf16.vlgmr.msra.gmra.mxu2 %v293_v26 }
 0x170   :  { %v371_v28 = vpop.f32.mrf.mxu2 }
 0x171   :  { %v372_v29 = vadd.f32 %v546_v27, %v371_v28 }
 0x173   :  { %v376_v30 = vmul.f32 0.5, %v372_v29 }
 0x175   :  { %551 = vtanh.f32 %v376_v30 }
 0x178   :  { %v373_v31 = vpop.f32.mrf.mxu2 }
 0x179   :  { %v374_v32 = vadd.f32 %v546_v27, %v373_v31 }
 0x17b   :  { %v552_v33 = vpop.eup %551  ;;  %v377_v34 = vmul.f32 0.5, %v374_v32 }
 0x17c   :  { %v380_v35 = vmul.f32 0.5, %v552_v33 }
 0x17d   :  { %553 = vtanh.f32 %v377_v34 }
 0x17e   :  { %v382_v36 = vadd.f32 0.5, %v380_v35 }
 0x180   :  { %384 = vst [vmem:[#allocation8] sm:$0xff] %v382_v36 }
 0x183   :  { %v554_v37 = vpop.eup %553 }
 0x184   :  { %v381_v38 = vmul.f32 0.5, %v554_v37 }
 0x186   :  { %v383_v39 = vadd.f32 0.5, %v381_v38 }
 0x188   :  { %385 = vst [vmem:[#allocation8 + $0x8] sm:$0xff] %v383_v39 }
 0x189   :  { %398 = dma.vmem_to_hbm [thread:$0]  %s391_s15, 256, %s393_s18, [#allocation4], %s661_s30, %s661_s30, %s662_s6  }
 0x18a   :  { %655 = dma.done.wait [#allocation4], 256  }
 0x18b   :  { %656 = vsyncadd [#allocation4], 4294967040 }
 0x18c   :  { %403 = vsyncpa [#allocation3], 1 }
 0x18d   :  { %404 = vsyncpa [#allocation6], 1 }
 0x18e   :  { %405 = vsyncpa [#allocation4], 1 }

</bundles_post_ra>
